<compile_context>
chip_gen: v7x
topology: tpu7x:2x2x1
jax: 0.10.0
libtpu: 0.0.40
codegen_flags: <defaults>
</compile_context>

<pallas_src>
import math

import jax
import jax.numpy as jnp
from jax.experimental import pallas as pl
from jax.experimental.pallas import tpu as pltpu


_TARGET_CHUNK_BYTES = 32 << 20   # ~32 MiB per DMA chunk (review-recommended size)
_MAX_IN_FLIGHT = 4               # DMAs concurrently in flight
_MAX_CHUNKS = 64                 # cap trace-time unrolling for very large tensors


def _build_copy_kernel(shape, itemsize):
    """Build a kernel copying an HBM array of `shape` into a new HBM buffer
    using a few large async DMAs, keeping up to _MAX_IN_FLIGHT in flight."""
    rows = shape[0]
    row_bytes = itemsize * max(1, math.prod(shape[1:]))
    chunk_rows = max(1, _TARGET_CHUNK_BYTES // row_bytes)
    # Cap the number of chunks so the trace-time unrolled issue loop stays small.
    chunk_rows = max(chunk_rows, -(-rows // _MAX_CHUNKS))

    chunks = []
    r = 0
    while r < rows:
        sz = min(chunk_rows, rows - r)
        chunks.append((r, sz))
        r += sz
    n_chunks = len(chunks)
    in_flight = min(_MAX_IN_FLIGHT, n_chunks)

    def kernel(x_ref, o_ref, sem):
        descs = []
        for c, (start, size) in enumerate(chunks):
            cp = pltpu.make_async_copy(
                x_ref.at[pl.ds(start, size)],
                o_ref.at[pl.ds(start, size)],
                sem.at[c % in_flight],
            )
            if c >= in_flight:
                # Free this semaphore slot before reusing it.
                descs[c - in_flight].wait()
            cp.start()
            descs.append(cp)
        # Drain the DMAs still in flight.
        for cp in descs[n_chunks - in_flight:]:
            cp.wait()

    return kernel, in_flight


def _identity_copy(x):
    """Materialize an identity copy of `x` via HBM->HBM DMA in native dtype."""
    if x.size == 0:
        return x
    if x.ndim == 0:
        return _identity_copy(x.reshape(1)).reshape(())

    itemsize = jnp.dtype(x.dtype).itemsize
    kernel, in_flight = _build_copy_kernel(x.shape, itemsize)
    nbytes = x.size * itemsize

    return pl.pallas_call(
        kernel,
        out_shape=jax.ShapeDtypeStruct(x.shape, x.dtype),
        in_specs=[pl.BlockSpec(memory_space=pl.ANY)],   # raw HBM ref, no auto-DMA
        out_specs=pl.BlockSpec(memory_space=pl.ANY),    # raw HBM ref, DMA target
        scratch_shapes=[pltpu.SemaphoreType.DMA((in_flight,))],
        cost_estimate=pl.CostEstimate(
            flops=0, transcendentals=0, bytes_accessed=2 * nbytes),
    )(x)


class UNet:
    """JAX/Pallas port of the reference UNet module (identity forward)."""

    def __init__(self, in_channels, out_channels):
        self.in_channels = in_channels
        self.out_channels = out_channels
        # NOTE: the reference __init__ defines no parameters.

    def forward(self, x):
        # TODO(synk): if the caller tolerates buffer aliasing, `return x` is the
        # zero-traffic optimum; we keep a materializing HBM->HBM DMA copy so a
        # distinct output buffer is produced through a Pallas kernel.
        return _identity_copy(x)

    def evalforward(self, x):
        return self.forward(x)

    def __call__(self, x):
        return self.forward(x)


if __name__ == "__main__":
    key = jax.random.PRNGKey(0)
    # Small NCHW shape consistent with a UNet-style input.
    x = jax.random.normal(key, (2, 4, 16, 16), dtype=jnp.float32)

    model = UNet(in_channels=4, out_channels=4)
    y = model(x)
    y = jax.block_until_ready(y)

    assert y.shape == x.shape and y.dtype == x.dtype
    assert bool(jnp.all(y == x))
    print("KERNEL_OK")
</pallas_src>

<mosaic_0001>
module attributes {stable_mosaic.version = 11 : i64} {
  func.func @kernel(%arg0: memref<2x4x16x16xf32, #tpu.memory_space<any>>, %arg1: memref<2x4x16x16xf32, #tpu.memory_space<any>>, %arg2: memref<1x!tpu.dma_semaphore, #tpu.memory_space<semaphore_mem>>) attributes {dimension_semantics = [], scalar_prefetch = 0 : i64, scratch_operands = 1 : i64, tpu.core_type = #tpu.core_type<tc>} {
    %c0_i32 = arith.constant 0 : i32
    %c0_i32_0 = arith.constant 0 : i32
    %c0_i32_1 = arith.constant 0 : i32
    %c0_i32_2 = arith.constant 0 : i32
    %c0_i32_3 = arith.constant 0 : i32
    %0 = tpu.memref_slice %arg0[%c0_i32_0, %c0_i32_1, %c0_i32_2, %c0_i32_3] : memref<2x4x16x16xf32, #tpu.memory_space<any>> -> memref<2x4x16x16xf32, #tpu.memory_space<any>>
    %c0_i32_4 = arith.constant 0 : i32
    %c0_i32_5 = arith.constant 0 : i32
    %c0_i32_6 = arith.constant 0 : i32
    %c0_i32_7 = arith.constant 0 : i32
    %1 = tpu.memref_slice %arg1[%c0_i32_4, %c0_i32_5, %c0_i32_6, %c0_i32_7] : memref<2x4x16x16xf32, #tpu.memory_space<any>> -> memref<2x4x16x16xf32, #tpu.memory_space<any>>
    %2 = tpu.memref_slice %arg2[%c0_i32] : memref<1x!tpu.dma_semaphore, #tpu.memory_space<semaphore_mem>> -> memref<1x!tpu.dma_semaphore, #tpu.memory_space<semaphore_mem>>
    %3 = tpu.memref_squeeze %2 : memref<1x!tpu.dma_semaphore, #tpu.memory_space<semaphore_mem>> -> memref<!tpu.dma_semaphore, #tpu.memory_space<semaphore_mem>>
    tpu.enqueue_dma source(%0 : memref<2x4x16x16xf32, #tpu.memory_space<any>>) target(%1 : memref<2x4x16x16xf32, #tpu.memory_space<any>>) target_semaphore(%3 : memref<!tpu.dma_semaphore, #tpu.memory_space<semaphore_mem>>)
    %c0_i32_8 = arith.constant 0 : i32
    %c0_i32_9 = arith.constant 0 : i32
    %c0_i32_10 = arith.constant 0 : i32
    %c0_i32_11 = arith.constant 0 : i32
    %c0_i32_12 = arith.constant 0 : i32
    %4 = tpu.memref_slice %arg0[%c0_i32_9, %c0_i32_10, %c0_i32_11, %c0_i32_12] : memref<2x4x16x16xf32, #tpu.memory_space<any>> -> memref<2x4x16x16xf32, #tpu.memory_space<any>>
    %c0_i32_13 = arith.constant 0 : i32
    %c0_i32_14 = arith.constant 0 : i32
    %c0_i32_15 = arith.constant 0 : i32
    %c0_i32_16 = arith.constant 0 : i32
    %5 = tpu.memref_slice %arg1[%c0_i32_13, %c0_i32_14, %c0_i32_15, %c0_i32_16] : memref<2x4x16x16xf32, #tpu.memory_space<any>> -> memref<2x4x16x16xf32, #tpu.memory_space<any>>
    %6 = tpu.memref_slice %arg2[%c0_i32_8] : memref<1x!tpu.dma_semaphore, #tpu.memory_space<semaphore_mem>> -> memref<1x!tpu.dma_semaphore, #tpu.memory_space<semaphore_mem>>
    %7 = tpu.memref_squeeze %6 : memref<1x!tpu.dma_semaphore, #tpu.memory_space<semaphore_mem>> -> memref<!tpu.dma_semaphore, #tpu.memory_space<semaphore_mem>>
    tpu.wait_dma2 semaphore(%7 : memref<!tpu.dma_semaphore, #tpu.memory_space<semaphore_mem>>) src(%4 : memref<2x4x16x16xf32, #tpu.memory_space<any>>) dst(%5 : memref<2x4x16x16xf32, #tpu.memory_space<any>>)
    return
  }
}

</mosaic_0001>

<bundles_post_ra>
// kernel: tpu_custom_call.1
= control target key start
LH: loop header
LB: loop body
LE: loop exit
PB: predicated region body
PF: predicated region fallthrough
CT: control target
= control target key end

     0   :  { %s36_s6 = smov [#allocation2]   ;;  %s37_s7 = smov [#allocation3]   ;;  %s55_s0 = inlined_call_operand.hbm [shape: f32[2,4,16,16], index: 0, kind: input, shape index: {}]   ;;  %s56_s1 = inlined_call_operand.hbm [shape: f32[2,4,16,16], index: 1, kind: output, shape index: {}]  }
   0x1   :  { %s38_s8 = smov 0  }
   0x2   :  { %18 = dma.general %s55_s0, 2048, %s56_s1, %s36_s6, %s37_s7, [#allocation4], %s38_s8, 0  }
   0x3   :  { %34 = dma.done.wait [#allocation2], 2048 }
   0x4   :  { %35 = vsyncadd [#allocation2], 4294965248 }
   0x5   :  { %24 = vsyncmov [#allocation2] }
   0x8   :  { %s25_s13 = vpop.sfrf %24 }
   0x9   :  { %p30_p0 = scmp.ne.s32.totalorder %s25_s13, 0 }
   0xb   :  { %29 = shalt.err (%p30_p0)  }

</bundles_post_ra>
